<compile_context>
chip_gen: v5e
topology: v5e:2x2
jax: 0.10.0
libtpu: 0.0.40
codegen_flags: <defaults>
</compile_context>

<pallas_src>
import jax
import jax.numpy as jnp
from jax.experimental import pallas as pl
from jax.experimental.pallas import tpu as pltpu

IN_FEATURES = 64
OUT_FEATURES = 10
OUT_PAD = 16  # padded output-feature width (== full array last dim => legal block)


def _round_up(x, m):
    return ((x + m - 1) // m) * m


def linear_kernel(x_ref, w_ref, b_ref, o_ref):
    # Cast x to bf16 in-kernel (VPU, free-ish) so the HBM stream stays a single
    # f32 read of x — no wrapper-side conversion pass.
    x_bf = x_ref[...].astype(jnp.bfloat16)
    acc = jnp.dot(x_bf, w_ref[...], preferred_element_type=jnp.float32)
    o_ref[...] = (acc + b_ref[...]).astype(o_ref.dtype)


def victim_nn_forward(x, w_padded, b_padded, *, block_b=8192):
    """y = x @ W + b.

    x:        [B, 64]   float32 (cast to bf16 inside the kernel for the MXU)
    w_padded: [64, 16]  bf16 weight, pre-transposed from PyTorch [10, 64] and
                        zero-padded on the output-feature axis to 16 lanes
    b_padded: [1, 16]   f32 bias, zero-padded to 16 lanes
    returns:  [B, 10]   f32
    """
    B, K = x.shape
    Kw, Np = w_padded.shape
    assert K == Kw == IN_FEATURES and Np == OUT_PAD

    # Batch padding quantum: 16 rows (bf16 sublane packing of the x tile).
    Bp = _round_up(B, 16)
    # Tile: aim for >= 2 grid steps so v7x's two TensorCores both get work,
    # capped at block_b to keep per-step VMEM small; tail pad is < one tile.
    TB = min(block_b, max(16, _round_up(pl.cdiv(Bp, 2), 16)))
    steps = pl.cdiv(Bp, TB)
    Bp = steps * TB
    if Bp != B:
        x = jnp.pad(x, ((0, Bp - B), (0, 0)))

    out = pl.pallas_call(
        linear_kernel,
        out_shape=jax.ShapeDtypeStruct((Bp, Np), jnp.float32),
        grid=(steps,),
        in_specs=[
            pl.BlockSpec((TB, K), lambda i: (i, 0)),   # x: tiled over batch
            pl.BlockSpec((K, Np), lambda i: (0, 0)),   # W: resident (grid-invariant)
            pl.BlockSpec((1, Np), lambda i: (0, 0)),   # bias: resident
        ],
        out_specs=pl.BlockSpec((TB, Np), lambda i: (i, 0)),
        compiler_params=pltpu.CompilerParams(
            dimension_semantics=("parallel",),  # megacore-shard batch on v7x
        ),
        cost_estimate=pl.CostEstimate(
            flops=2 * Bp * K * Np,
            transcendentals=0,
            bytes_accessed=(Bp * K * 4          # x  (f32 in)
                            + K * Np * 2        # W  (bf16)
                            + Np * 4            # bias (f32)
                            + Bp * Np * 4),     # out (f32)
        ),
    )(x, w_padded, b_padded)

    return out[:B, :OUT_FEATURES]


def init_params(key, in_features=IN_FEATURES, out_features=OUT_FEATURES,
                dtype=jnp.float32):
    """PyTorch nn.Linear default init: U(-1/sqrt(in), 1/sqrt(in)).

    Returns (w [64,10] f32, b [1,10] f32, w_padded [64,16] bf16,
    b_padded [1,16] f32) — padded params already in their kernel dtypes.
    """
    kw, kb = jax.random.split(key)
    bound = 1.0 / jnp.sqrt(jnp.array(in_features, dtype))
    w = jax.random.uniform(kw, (in_features, out_features), dtype,
                           minval=-bound, maxval=bound)
    b = jax.random.uniform(kb, (1, out_features), dtype,
                           minval=-bound, maxval=bound)
    w_padded = jnp.pad(w, ((0, 0), (0, OUT_PAD - out_features))).astype(jnp.bfloat16)
    b_padded = jnp.pad(b, ((0, 0), (0, OUT_PAD - out_features))).astype(jnp.float32)
    return w, b, w_padded, b_padded


if __name__ == "__main__":
    key = jax.random.PRNGKey(0)
    k_x, k_p = jax.random.split(key)

    batch = 8
    x = jax.random.normal(k_x, (batch, IN_FEATURES), dtype=jnp.float32)
    w, b, w_padded, b_padded = init_params(k_p)

    y = victim_nn_forward(x, w_padded, b_padded)
    jax.block_until_ready(y)
    assert y.shape == (batch, OUT_FEATURES)

    # Reference 1: matches the kernel's bf16-input / f32-accumulate math.
    x_bf = x.astype(jnp.bfloat16).astype(jnp.float32)
    w_bf = w.astype(jnp.bfloat16).astype(jnp.float32)
    y_ref_bf16 = x_bf @ w_bf + b
    assert jnp.allclose(y, y_ref_bf16, atol=1e-4, rtol=1e-4)

    # Reference 2: full-precision semantics of the original nn.Linear (loose
    # tolerance covers the bf16 rounding of x and W).
    y_ref_f32 = x @ w + b
    assert jnp.allclose(y, y_ref_f32, atol=5e-2, rtol=5e-2)

    print("KERNEL_OK")
</pallas_src>

<mosaic_0001>
module attributes {stable_mosaic.version = 11 : i64} {
  func.func @linear_kernel(%arg0: i32, %arg1: memref<16x64xf32, #tpu.memory_space<vmem>>, %arg2: memref<64x16xbf16, #tpu.memory_space<vmem>>, %arg3: memref<1x16xf32, #tpu.memory_space<vmem>>, %arg4: memref<16x16xf32, #tpu.memory_space<vmem>>) attributes {dimension_semantics = [#tpu.dimension_semantics<parallel>], iteration_bounds = array<i64: 1>, scalar_prefetch = 0 : i64, scratch_operands = 0 : i64, tpu.core_type = #tpu.core_type<tc>, window_params = [{transform_indices = @transform_0, window_bounds = array<i64: 16, 64>}, {pipeline_mode = #tpu.pipeline_mode<synchronous>, transform_indices = @transform_1, window_bounds = array<i64: 64, 16>}, {pipeline_mode = #tpu.pipeline_mode<synchronous>, transform_indices = @transform_2, window_bounds = array<i64: 1, 16>}, {transform_indices = @transform_3, window_bounds = array<i64: 16, 16>}]} {
    %c0 = arith.constant 0 : index
    %c0_0 = arith.constant 0 : index
    %0 = vector.load %arg1[%c0, %c0_0] : memref<16x64xf32, #tpu.memory_space<vmem>>, vector<16x64xf32>
    %1 = arith.truncf %0 : vector<16x64xf32> to vector<16x64xbf16>
    %c0_1 = arith.constant 0 : index
    %c0_2 = arith.constant 0 : index
    %2 = vector.load %arg2[%c0_1, %c0_2] : memref<64x16xbf16, #tpu.memory_space<vmem>>, vector<64x16xbf16>
    %cst = arith.constant dense<0.000000e+00> : vector<16x16xf32>
    %3 = tpu.matmul %1, %2, %cst {dimension_numbers = #tpu.dot_dimension_numbers<[1], [0], [0], [1], [0, 0, 1, 1], [], []>} : vector<16x64xbf16>, vector<64x16xbf16>, vector<16x16xf32> -> vector<16x16xf32>
    %c0_3 = arith.constant 0 : index
    %c0_4 = arith.constant 0 : index
    %4 = vector.load %arg3[%c0_3, %c0_4] : memref<1x16xf32, #tpu.memory_space<vmem>>, vector<1x16xf32>
    %5 = vector.broadcast %4 : vector<1x16xf32> to vector<16x16xf32>
    %6 = arith.addf %3, %5 : vector<16x16xf32>
    %c0_5 = arith.constant 0 : index
    %c0_6 = arith.constant 0 : index
    %7 = vector.load %arg4[%c0_5, %c0_6] : memref<16x16xf32, #tpu.memory_space<vmem>>, vector<16x16xf32>
    tpu.vector_store %arg4[%c0_5, %c0_6], %6 {strides = array<i32>} : memref<16x16xf32, #tpu.memory_space<vmem>>, vector<16x16xf32>,
    return
  }
  func.func @transform_0(%arg0: i32) -> (i32, i32) {
    %c0_i32 = arith.constant 0 : i32
    %c0_i32_0 = arith.constant 0 : i32
    return %arg0, %c0_i32 : i32, i32
  }
  func.func @transform_1(%arg0: i32) -> (i32, i32) {
    %c0_i32 = arith.constant 0 : i32
    %c0_i32_0 = arith.constant 0 : i32
    %c0_i32_1 = arith.constant 0 : i32
    return %c0_i32, %c0_i32_0 : i32, i32
  }
  func.func @transform_2(%arg0: i32) -> (i32, i32) {
    %c0_i32 = arith.constant 0 : i32
    %c0_i32_0 = arith.constant 0 : i32
    %c0_i32_1 = arith.constant 0 : i32
    return %c0_i32, %c0_i32_0 : i32, i32
  }
  func.func @transform_3(%arg0: i32) -> (i32, i32) {
    %c0_i32 = arith.constant 0 : i32
    %c0_i32_0 = arith.constant 0 : i32
    return %arg0, %c0_i32 : i32, i32
  }
}

</mosaic_0001>

<bundles_post_ra>
// kernel: tpu_custom_call.1
= control target key start
LH: loop header
LB: loop body
LE: loop exit
PB: predicated region body
PF: predicated region fallthrough
CT: control target
= control target key end

     0   :  { %s192_s0 = inlined_call_operand.vmem [shape: f32[16,64], index: 0, kind: input, shape index: {}]   ;;  %s193_s1 = inlined_call_operand.vmem [shape: bf16[64,16], index: 1, kind: input, shape index: {}]   ;;  %s194_s2 = inlined_call_operand.vmem [shape: f32[1,16], index: 2, kind: input, shape index: {}]   ;;  %s195_s3 = inlined_call_operand.hbm [shape: f32[16,16], index: 3, kind: output, shape index: {}]  }
   0x1   :  { %v114_v0 = vld [vmem:[%s193_s1 + $0x18] sm:$0xff]  ;;  %v113_v1 = vld [vmem:[%s193_s1 + $0x10] sm:$0xff] }
   0x2   :  { %63 = vmatpush.bf16.msra.mxu0 %v114_v0 }
   0x3   :  { %8 = vsyncpa [#allocation3], 0  ;;  %v112_v2 = vld [vmem:[%s193_s1 + $0x8] sm:$0xff]  ;;  %v111_v3 = vld [vmem:[%s193_s1] sm:$0xff]  ;;  %vm55_vm0 = vcmask 523264   ;;  %vm73_vm1 = vcmask 130048  }
   0x4   :  { %v16_v4 = vld [vmem:[%s192_s0] sm:$0xff]  ;;  %v17_v5 = vld [vmem:[%s192_s0 + $0x8] sm:$0xff]  ;;  %s145_s1 = smov [#allocation2]   ;;  %s82_s29 = sshll.u32 %s195_s3, 4  ;;  %s83_s29 = int_to_ptr.hbm [resolvable:$true] %s82_s29 }
   0x5   :  { %v18_v6 = vpack.c.bf16 %v17_v5, %v16_v4  ;;  %v118_v7 = vld [vmem:[%s194_s2] ss:$0 sm:$0xff]  ;;  %s80_s26 = sshll.u32 %s145_s1, 4  ;;  %s146_s0 = smov 128   ;;  %s81_s26 = int_to_ptr.vmem [resolvable:$true] %s80_s26 }
   0x6   :  { %64 = vmatpush.bf16.msra.mxu0 %v113_v1  ;;  %s147_s30 = smov 8  }
   0xa   :  { %65 = vmatpush.bf16.msra.mxu0 %v112_v2 }
   0xe   :  { %66 = vmatpush.bf16.msra.mxu0 %v111_v3 }
  0x11   :  { %110 = vmatmul.msk.bf16.vlgmr.msra.gmra.mxu0 %vm55_vm0, %v18_v6 }
  0x8e   :  { %v68_v8 = vpop.f32.mrf.mxu0 }
  0x8f   :  { %v69_v9 = vadd.f32 %v118_v7, %v68_v8 }
  0x91   :  { %74 = vst.msk [vmem:[#allocation2] sm:$0xff] %vm73_vm1, %v69_v9 }
  0x96   :  { %v70_v10 = vpop.f32.mrf.mxu0 }
  0x97   :  { %v71_v11 = vadd.f32 %v118_v7, %v70_v10 }
  0x99   :  { %75 = vst.msk [vmem:[#allocation2 + $0x8] sm:$0xff] %vm73_vm1, %v71_v11 }
  0x9a   :  { %88 = dma.vmem_to_hbm [thread:$0]  %s81_s26, 256, %s83_s29, [#allocation3], %s146_s0, %s146_s0, %s147_s30  }
  0x9b   :  { %143 = dma.done.wait [#allocation3], 256  }
  0x9c   :  { %144 = vsyncadd [#allocation3], 4294967040 }
  0x9d   :  { %93 = vsyncpa [#allocation3], 1 }

</bundles_post_ra>
